<compile_context>
chip_gen: v7x
topology: tpu7x:2x2x1
jax: 0.10.0
libtpu: 0.0.40
codegen_flags: <defaults>
</compile_context>

<pallas_src>
import functools

import jax
import jax.numpy as jnp
from jax.experimental import pallas as pl
from jax.experimental.pallas import tpu as pltpu

HIDDEN = 64            # per-tower hidden width (PyTorch spec: nn.Linear(_, 64))
FUSED_H = 2 * HIDDEN   # fused actor+critic hidden width = 128 (full MXU lane dim)
OUT_PAD = 128          # lane-dense padded output slab width


def _softplus(x):
    # numerically stable softplus, matches F.softplus default (beta=1)
    return jnp.maximum(x, 0.0) + jnp.log1p(jnp.exp(-jnp.abs(x)))


def ppo_kernel(x_ref, w1_ref, b1_ref, w2_ref, b2_ref, w3_ref, b3_ref,
               out_ref, *, out_dim):
    x = x_ref[...]                                                  # [TB, in]

    # fused actor|critic tower: 3 full-lane-width matmuls
    h = jnp.tanh(jnp.dot(x, w1_ref[...], preferred_element_type=jnp.float32)
                 + b1_ref[...])                                     # [TB, 128]
    h = jnp.tanh(jnp.dot(h, w2_ref[...], preferred_element_type=jnp.float32)
                 + b2_ref[...])                                     # [TB, 128]
    o = (jnp.dot(h, w3_ref[...], preferred_element_type=jnp.float32)
         + b3_ref[...])                                             # [TB, 128]

    # std = softplus(raw) + 1e-5 applied in-place under a lane mask so the
    # output stays lane-dense (single unmasked 128-wide store).
    lane = jax.lax.broadcasted_iota(jnp.int32, o.shape, 1)
    is_std = (lane >= out_dim) & (lane < 2 * out_dim)
    o = jnp.where(is_std, _softplus(o) + 1e-5, o)

    out_ref[...] = o.astype(out_ref.dtype)


def pack_params(p, out_dim, hidden=HIDDEN, out_pad=OUT_PAD):
    """Pack per-tower [in, out] weights into fused / block-diagonal matrices."""
    f32 = jnp.float32
    # layer 1: concat on the output (lane) axis
    w1 = jnp.concatenate([p["aw1"], p["cw1"]], axis=1).astype(f32)   # [in, 128]
    b1 = jnp.concatenate([p["ab1"], p["cb1"]], axis=1).astype(f32)   # [1, 128]
    # layer 2: block diagonal (no actor/critic cross-talk)
    w2 = jnp.zeros((2 * hidden, 2 * hidden), f32)
    w2 = w2.at[:hidden, :hidden].set(p["aw2"])
    w2 = w2.at[hidden:, hidden:].set(p["cw2"])                       # [128, 128]
    b2 = jnp.concatenate([p["ab2"], p["cb2"]], axis=1).astype(f32)   # [1, 128]
    # layer 3: block diagonal, zero-padded to a lane-dense 128-wide output
    w3 = jnp.zeros((2 * hidden, out_pad), f32)
    w3 = w3.at[:hidden, :2 * out_dim].set(p["aw3"])                  # mean|std
    w3 = w3.at[hidden:, 2 * out_dim:2 * out_dim + 1].set(p["cw3"])   # value
    b3 = jnp.zeros((1, out_pad), f32)
    b3 = b3.at[:, :2 * out_dim].set(p["ab3"][0])
    b3 = b3.at[:, 2 * out_dim:2 * out_dim + 1].set(p["cb3"][0])
    return w1, b1, w2, b2, w3, b3


def ppo_forward(state, packed, out_dim, *, tile_b=256):
    """state: [B, input_dim] f32. packed: pack_params(...) output.
    Returns (mean, std, value) — the Normal(mean, std) params + critic value."""
    w1, b1, w2, b2, w3, b3 = packed
    B, in_dim = state.shape

    # batch tile: multiple of 8 sublanes, no larger than the (padded) batch
    tile_b = max(8, min(tile_b, ((B + 7) // 8) * 8))
    tile_b = ((tile_b + 7) // 8) * 8
    n_tiles = pl.cdiv(B, tile_b)
    b_pad = n_tiles * tile_b
    if b_pad != B:
        state = jnp.pad(state, ((0, b_pad - B), (0, 0)))

    kernel = functools.partial(ppo_kernel, out_dim=out_dim)

    # explicit per-array BlockSpecs (weights resident: constant index_maps)
    in_specs = [
        pl.BlockSpec((tile_b, in_dim), lambda i: (i, 0)),       # state (tiled)
        pl.BlockSpec((in_dim, FUSED_H), lambda i: (0, 0)),      # w1
        pl.BlockSpec((1, FUSED_H), lambda i: (0, 0)),           # b1
        pl.BlockSpec((FUSED_H, FUSED_H), lambda i: (0, 0)),     # w2
        pl.BlockSpec((1, FUSED_H), lambda i: (0, 0)),           # b2
        pl.BlockSpec((FUSED_H, OUT_PAD), lambda i: (0, 0)),     # w3
        pl.BlockSpec((1, OUT_PAD), lambda i: (0, 0)),           # b3
    ]
    out_specs = pl.BlockSpec((tile_b, OUT_PAD), lambda i: (i, 0))
    out_shape = jax.ShapeDtypeStruct((b_pad, OUT_PAD), jnp.float32)

    flops = 2 * b_pad * (in_dim * FUSED_H + FUSED_H * FUSED_H + FUSED_H * OUT_PAD)
    transcendentals = b_pad * (2 * FUSED_H + out_dim)           # tanh x2, exp in softplus
    bytes_accessed = 4 * (b_pad * in_dim + b_pad * OUT_PAD
                          + in_dim * FUSED_H + FUSED_H * FUSED_H
                          + FUSED_H * OUT_PAD + 3 * FUSED_H)

    slab = pl.pallas_call(
        kernel,
        out_shape=out_shape,
        grid=(n_tiles,),
        in_specs=in_specs,
        out_specs=out_specs,
        compiler_params=pltpu.CompilerParams(
            dimension_semantics=("parallel",)),                 # 2x on v7x dual-TC
        cost_estimate=pl.CostEstimate(flops=flops,
                                      transcendentals=transcendentals,
                                      bytes_accessed=bytes_accessed),
    )(state, w1, b1, w2, b2, w3, b3)

    # wrapper-side slicing of the lane-dense slab (free layout plumbing)
    mean = slab[:B, :out_dim]
    std = slab[:B, out_dim:2 * out_dim]
    value = slab[:B, 2 * out_dim:2 * out_dim + 1]
    # TODO(synk): torch.distributions.Normal object itself has no Pallas
    # equivalent; we return its (mean, std) parameters plus the critic value.
    return mean, std, value


def init_params(key, input_dim, output_dim, hidden=HIDDEN):
    """nn.Linear-style init: U(-1/sqrt(fan_in), +1/sqrt(fan_in)).
    Weights stored as [in, out]; biases as [1, out]."""
    def linear(k, fan_in, fan_out):
        kw, kb = jax.random.split(k)
        bound = 1.0 / jnp.sqrt(fan_in)
        w = jax.random.uniform(kw, (fan_in, fan_out), jnp.float32, -bound, bound)
        b = jax.random.uniform(kb, (1, fan_out), jnp.float32, -bound, bound)
        return w, b

    keys = jax.random.split(key, 6)
    aw1, ab1 = linear(keys[0], input_dim, hidden)
    aw2, ab2 = linear(keys[1], hidden, hidden)
    aw3, ab3 = linear(keys[2], hidden, output_dim * 2)
    cw1, cb1 = linear(keys[3], input_dim, hidden)
    cw2, cb2 = linear(keys[4], hidden, hidden)
    cw3, cb3 = linear(keys[5], hidden, 1)
    return dict(aw1=aw1, ab1=ab1, aw2=aw2, ab2=ab2, aw3=aw3, ab3=ab3,
                cw1=cw1, cb1=cb1, cw2=cw2, cb2=cb2, cw3=cw3, cb3=cb3)


def _reference(state, p):
    """Pure-JAX reference (matches the PyTorch forward)."""
    h = jnp.tanh(state @ p["aw1"] + p["ab1"])
    h = jnp.tanh(h @ p["aw2"] + p["ab2"])
    a = h @ p["aw3"] + p["ab3"]
    d = a.shape[-1] // 2
    mean, std_raw = a[:, :d], a[:, d:]
    std = jax.nn.softplus(std_raw) + 1e-5
    g = jnp.tanh(state @ p["cw1"] + p["cb1"])
    g = jnp.tanh(g @ p["cw2"] + p["cb2"])
    value = g @ p["cw3"] + p["cb3"]
    return mean, std, value


if __name__ == "__main__":
    key = jax.random.PRNGKey(0)
    k_params, k_state = jax.random.split(key)

    input_dim, output_dim, batch = 16, 4, 2
    params = init_params(k_params, input_dim, output_dim)
    packed = pack_params(params, output_dim)
    state = jax.random.normal(k_state, (batch, input_dim), jnp.float32)

    mean, std, value = ppo_forward(state, packed, output_dim)
    jax.block_until_ready((mean, std, value))

    r_mean, r_std, r_value = _reference(state, params)
    assert mean.shape == (batch, output_dim) and std.shape == (batch, output_dim)
    assert value.shape == (batch, 1)
    assert jnp.allclose(mean, r_mean, atol=1e-4), "mean mismatch"
    assert jnp.allclose(std, r_std, atol=1e-4), "std mismatch"
    assert jnp.allclose(value, r_value, atol=1e-4), "value mismatch"
    assert bool(jnp.all(std > 0)), "std must be positive for Normal(mean, std)"

    print("KERNEL_OK")
</pallas_src>

<mosaic_0001>
module attributes {stable_mosaic.version = 11 : i64} {
  func.func @ppo_kernel(%arg0: i32, %arg1: memref<8x16xf32, #tpu.memory_space<vmem>>, %arg2: memref<16x128xf32, #tpu.memory_space<vmem>>, %arg3: memref<1x128xf32, #tpu.memory_space<vmem>>, %arg4: memref<128x128xf32, #tpu.memory_space<vmem>>, %arg5: memref<1x128xf32, #tpu.memory_space<vmem>>, %arg6: memref<128x128xf32, #tpu.memory_space<vmem>>, %arg7: memref<1x128xf32, #tpu.memory_space<vmem>>, %arg8: memref<8x128xf32, #tpu.memory_space<vmem>>) attributes {dimension_semantics = [#tpu.dimension_semantics<parallel>], iteration_bounds = array<i64: 1>, scalar_prefetch = 0 : i64, scratch_operands = 0 : i64, tpu.core_type = #tpu.core_type<tc>, window_params = [{transform_indices = @transform_0, window_bounds = array<i64: 8, 16>}, {pipeline_mode = #tpu.pipeline_mode<synchronous>, transform_indices = @transform_1, window_bounds = array<i64: 16, 128>}, {pipeline_mode = #tpu.pipeline_mode<synchronous>, transform_indices = @transform_2, window_bounds = array<i64: 1, 128>}, {pipeline_mode = #tpu.pipeline_mode<synchronous>, transform_indices = @transform_3, window_bounds = array<i64: 128, 128>}, {pipeline_mode = #tpu.pipeline_mode<synchronous>, transform_indices = @transform_4, window_bounds = array<i64: 1, 128>}, {pipeline_mode = #tpu.pipeline_mode<synchronous>, transform_indices = @transform_5, window_bounds = array<i64: 128, 128>}, {pipeline_mode = #tpu.pipeline_mode<synchronous>, transform_indices = @transform_6, window_bounds = array<i64: 1, 128>}, {transform_indices = @transform_7, window_bounds = array<i64: 8, 128>}]} {
    %c0 = arith.constant 0 : index
    %c0_0 = arith.constant 0 : index
    %0 = vector.load %arg1[%c0, %c0_0] : memref<8x16xf32, #tpu.memory_space<vmem>>, vector<8x16xf32>
    %c0_1 = arith.constant 0 : index
    %c0_2 = arith.constant 0 : index
    %1 = vector.load %arg2[%c0_1, %c0_2] : memref<16x128xf32, #tpu.memory_space<vmem>>, vector<16x128xf32>
    %cst = arith.constant dense<0.000000e+00> : vector<8x128xf32>
    %2 = tpu.matmul %0, %1, %cst {dimension_numbers = #tpu.dot_dimension_numbers<[1], [0], [0], [1], [0, 0, 1, 1], [], []>} : vector<8x16xf32>, vector<16x128xf32>, vector<8x128xf32> -> vector<8x128xf32>
    %c0_3 = arith.constant 0 : index
    %c0_4 = arith.constant 0 : index
    %3 = vector.load %arg3[%c0_3, %c0_4] : memref<1x128xf32, #tpu.memory_space<vmem>>, vector<1x128xf32>
    %4 = vector.broadcast %3 : vector<1x128xf32> to vector<8x128xf32>
    %5 = arith.addf %2, %4 : vector<8x128xf32>
    %6 = math.tanh %5 : vector<8x128xf32>
    %c0_5 = arith.constant 0 : index
    %c0_6 = arith.constant 0 : index
    %7 = vector.load %arg4[%c0_5, %c0_6] : memref<128x128xf32, #tpu.memory_space<vmem>>, vector<128x128xf32>
    %cst_7 = arith.constant dense<0.000000e+00> : vector<8x128xf32>
    %8 = tpu.matmul %6, %7, %cst_7 {dimension_numbers = #tpu.dot_dimension_numbers<[1], [0], [0], [1], [0, 0, 1, 1], [], []>} : vector<8x128xf32>, vector<128x128xf32>, vector<8x128xf32> -> vector<8x128xf32>
    %c0_8 = arith.constant 0 : index
    %c0_9 = arith.constant 0 : index
    %9 = vector.load %arg5[%c0_8, %c0_9] : memref<1x128xf32, #tpu.memory_space<vmem>>, vector<1x128xf32>
    %10 = vector.broadcast %9 : vector<1x128xf32> to vector<8x128xf32>
    %11 = arith.addf %8, %10 : vector<8x128xf32>
    %12 = math.tanh %11 : vector<8x128xf32>
    %c0_10 = arith.constant 0 : index
    %c0_11 = arith.constant 0 : index
    %13 = vector.load %arg6[%c0_10, %c0_11] : memref<128x128xf32, #tpu.memory_space<vmem>>, vector<128x128xf32>
    %cst_12 = arith.constant dense<0.000000e+00> : vector<8x128xf32>
    %14 = tpu.matmul %12, %13, %cst_12 {dimension_numbers = #tpu.dot_dimension_numbers<[1], [0], [0], [1], [0, 0, 1, 1], [], []>} : vector<8x128xf32>, vector<128x128xf32>, vector<8x128xf32> -> vector<8x128xf32>
    %c0_13 = arith.constant 0 : index
    %c0_14 = arith.constant 0 : index
    %15 = vector.load %arg7[%c0_13, %c0_14] : memref<1x128xf32, #tpu.memory_space<vmem>>, vector<1x128xf32>
    %16 = vector.broadcast %15 : vector<1x128xf32> to vector<8x128xf32>
    %17 = arith.addf %14, %16 : vector<8x128xf32>
    %18 = tpu.iota {dimensions = array<i32: 1>} : vector<8x128xi32>
    %c4_i32 = arith.constant 4 : i32
    %19 = vector.broadcast %c4_i32 : i32 to vector<8x128xi32>
    %20 = arith.cmpi sge, %18, %19 : vector<8x128xi32>
    %c8_i32 = arith.constant 8 : i32
    %21 = vector.broadcast %c8_i32 : i32 to vector<8x128xi32>
    %22 = arith.cmpi slt, %18, %21 : vector<8x128xi32>
    %23 = arith.andi %20, %22 : vector<8x128xi1>
    %cst_15 = arith.constant 0.000000e+00 : f32
    %24 = vector.broadcast %cst_15 : f32 to vector<8x128xf32>
    %25 = arith.maximumf %17, %24 : vector<8x128xf32>
    %26 = math.absf %17 : vector<8x128xf32>
    %cst_16 = arith.constant 0.000000e+00 : f32
    %27 = vector.broadcast %cst_16 : f32 to vector<8x128xf32>
    %28 = arith.subf %27, %26 : vector<8x128xf32>
    %29 = math.exp %28 : vector<8x128xf32>
    %30 = math.log1p %29 : vector<8x128xf32>
    %31 = arith.addf %25, %30 : vector<8x128xf32>
    %cst_17 = arith.constant 9.99999974E-6 : f32
    %32 = vector.broadcast %cst_17 : f32 to vector<8x128xf32>
    %33 = arith.addf %31, %32 : vector<8x128xf32>
    %34 = arith.select %23, %33, %17 : vector<8x128xi1>, vector<8x128xf32>
    %c0_18 = arith.constant 0 : index
    %c0_19 = arith.constant 0 : index
    %35 = vector.load %arg8[%c0_18, %c0_19] : memref<8x128xf32, #tpu.memory_space<vmem>>, vector<8x128xf32>
    tpu.vector_store %arg8[%c0_18, %c0_19], %34 {strides = array<i32>} : memref<8x128xf32, #tpu.memory_space<vmem>>, vector<8x128xf32>,
    return
  }
  func.func @transform_0(%arg0: i32) -> (i32, i32) {
    %c0_i32 = arith.constant 0 : i32
    %c0_i32_0 = arith.constant 0 : i32
    return %arg0, %c0_i32 : i32, i32
  }
  func.func @transform_1(%arg0: i32) -> (i32, i32) {
    %c0_i32 = arith.constant 0 : i32
    %c0_i32_0 = arith.constant 0 : i32
    %c0_i32_1 = arith.constant 0 : i32
    return %c0_i32, %c0_i32_0 : i32, i32
  }
  func.func @transform_2(%arg0: i32) -> (i32, i32) {
    %c0_i32 = arith.constant 0 : i32
    %c0_i32_0 = arith.constant 0 : i32
    %c0_i32_1 = arith.constant 0 : i32
    return %c0_i32, %c0_i32_0 : i32, i32
  }
  func.func @transform_3(%arg0: i32) -> (i32, i32) {
    %c0_i32 = arith.constant 0 : i32
    %c0_i32_0 = arith.constant 0 : i32
    %c0_i32_1 = arith.constant 0 : i32
    return %c0_i32, %c0_i32_0 : i32, i32
  }
  func.func @transform_4(%arg0: i32) -> (i32, i32) {
    %c0_i32 = arith.constant 0 : i32
    %c0_i32_0 = arith.constant 0 : i32
    %c0_i32_1 = arith.constant 0 : i32
    return %c0_i32, %c0_i32_0 : i32, i32
  }
  func.func @transform_5(%arg0: i32) -> (i32, i32) {
    %c0_i32 = arith.constant 0 : i32
    %c0_i32_0 = arith.constant 0 : i32
    %c0_i32_1 = arith.constant 0 : i32
    return %c0_i32, %c0_i32_0 : i32, i32
  }
  func.func @transform_6(%arg0: i32) -> (i32, i32) {
    %c0_i32 = arith.constant 0 : i32
    %c0_i32_0 = arith.constant 0 : i32
    %c0_i32_1 = arith.constant 0 : i32
    return %c0_i32, %c0_i32_0 : i32, i32
  }
  func.func @transform_7(%arg0: i32) -> (i32, i32) {
    %c0_i32 = arith.constant 0 : i32
    %c0_i32_0 = arith.constant 0 : i32
    return %arg0, %c0_i32 : i32, i32
  }
}

</mosaic_0001>

<bundles_post_ra>
// kernel: tpu_custom_call.1
= control target key start
LH: loop header
LB: loop body
LE: loop exit
PB: predicated region body
PF: predicated region fallthrough
CT: control target
= control target key end

     0   :  { %12 = vsyncpa [#allocation3], 0  ;;  %s845_s0 = inlined_call_operand.hbm [shape: f32[8,16], index: 0, kind: input, shape index: {}]   ;;  %s846_s1 = inlined_call_operand.hbm [shape: f32[16,128], index: 1, kind: input, shape index: {}]   ;;  %s847_s2 = inlined_call_operand.vmem [shape: f32[1,128], index: 2, kind: input, shape index: {}]   ;;  %s848_s3 = inlined_call_operand.hbm [shape: f32[128,128], index: 3, kind: input, shape index: {}]   ;;  %s849_s4 = inlined_call_operand.vmem [shape: f32[1,128], index: 4, kind: input, shape index: {}]   ;;  %s850_s5 = inlined_call_operand.hbm [shape: f32[128,128], index: 5, kind: input, shape index: {}]   ;;  %s851_s6 = inlined_call_operand.vmem [shape: f32[1,128], index: 6, kind: input, shape index: {}]   ;;  %s852_s7 = inlined_call_operand.hbm [shape: f32[8,128], index: 7, kind: output, shape index: {}]  }
   0x1   :  { %13 = vsyncpa [#allocation6], 0 }
   0x2   :  { %14 = vsyncpa [#allocation9], 0 }
   0x3   :  { %15 = vsyncpa [#allocation4], 0  ;;  %s697_s24 = smov [#allocation5]   ;;  %s579_s28 = scalar_lea.hbm %s846_s1, 256 }
   0x4   :  { %s31_s25 = sshll.u32 %s697_s24, 4  ;;  %p580_p0 = scmp.ne.s32.totalorder %s846_s1, %s579_s28  ;;  %s32_s25 = int_to_ptr.vmem [resolvable:$true] %s31_s25 }
   0x5   :  { %p583_p1 = scmp.lt.u32.totalorder %s579_s28, %s846_s1 }
   0x7   :  { %p585_p2 = pnand %p583_p1, %p580_p0 }
   0x9   :  { %588 = shalt.err (!%p585_p2)
}
   0xa   :  { %s589_s10 = scalar_lea.vmem %s32_s25, 256  ;;  %p594_p4 = scmp.lt.s32.totalorder %s32_s25, %s32_s25 }
   0xb   :  { %p590_p3 = scmp.ne.s32.totalorder %s32_s25, %s589_s10  ;;  %p595_p5 = scmp.lt.s32.totalorder %s589_s10, %s589_s10 }
   0xd   :  { %p596_p6 = por %p595_p5, %p594_p4 }
   0xf   :  { %p597_p7 = pnand %p596_p6, %p590_p3 }
  0x11   :  { %600 = shalt.err (!%p597_p7)
}
  0x12   :  { %s698_s11 = smov 128   ;;  %s699_s12 = smov 8  }
  0x13   :  { %37 = dma.hbm_to_vmem [thread:$0]  %s846_s1, 256, %s32_s25, [#allocation6], %s698_s11, %s698_s11, %s699_s12  }
  0x14   :  { %s700_s15 = smov [#allocation2]   ;;  %s701_s17 = smov [#allocation7]  }
  0x15   :  { %s22_s16 = sshll.u32 %s700_s15, 4  ;;  %s45_s18 = sshll.u32 %s701_s17, 4  ;;  %s23_s16 = int_to_ptr.vmem [resolvable:$true] %s22_s16  ;;  %s46_s18 = int_to_ptr.vmem [resolvable:$true] %s45_s18 }
  0x16   :  { %s601_s21 = scalar_lea.hbm %s845_s0, 128 }
  0x17   :  { %p602_p8 = scmp.ne.s32.totalorder %s845_s0, %s601_s21  ;;  %p605_p9 = scmp.lt.u32.totalorder %s601_s21, %s845_s0 }
  0x19   :  { %p607_p10 = pnand %p605_p9, %p602_p8 }
  0x1b   :  { %610 = shalt.err (!%p607_p10)
}
  0x1c   :  { %s611_s1 = scalar_lea.vmem %s23_s16, 128  ;;  %p616_p12 = scmp.lt.s32.totalorder %s23_s16, %s23_s16 }
  0x1d   :  { %p612_p11 = scmp.ne.s32.totalorder %s23_s16, %s611_s1  ;;  %p617_p13 = scmp.lt.s32.totalorder %s611_s1, %s611_s1 }
  0x1f   :  { %p618_p0 = por %p617_p13, %p616_p12 }
  0x21   :  { %p619_p1 = pnand %p618_p0, %p612_p11 }
  0x23   :  { %622 = shalt.err (!%p619_p1)
}
  0x24   :  { %25 = dma.hbm_to_vmem [thread:$0]  %s845_s0, 128, %s23_s16, [#allocation3]  }
  0x25   :  { %s623_s30 = scalar_lea.hbm %s848_s3, 2048 }
  0x26   :  { %p624_p2 = scmp.ne.s32.totalorder %s848_s3, %s623_s30  ;;  %p627_p3 = scmp.lt.u32.totalorder %s623_s30, %s848_s3 }
  0x28   :  { %p629_p4 = pnand %p627_p3, %p624_p2 }
  0x2a   :  { %632 = shalt.err (!%p629_p4)
}
  0x2b   :  { %s633_s14 = scalar_lea.vmem %s46_s18, 2048  ;;  %p638_p6 = scmp.lt.s32.totalorder %s46_s18, %s46_s18 }
  0x2c   :  { %p634_p5 = scmp.ne.s32.totalorder %s46_s18, %s633_s14  ;;  %p639_p7 = scmp.lt.s32.totalorder %s633_s14, %s633_s14 }
  0x2e   :  { %p640_p8 = por %p639_p7, %p638_p6 }
  0x30   :  { %p641_p9 = pnand %p640_p8, %p634_p5 }
  0x32   :  { %644 = shalt.err (!%p641_p9)
}
  0x33   :  { %51 = dma.hbm_to_vmem [thread:$0]  %s848_s3, 2048, %s46_s18, [#allocation6], %s698_s11, %s698_s11, %s699_s12  }
  0x34   :  { %s702_s16 = smov [#allocation8]   ;;  %s645_s21 = scalar_lea.hbm %s850_s5, 2048 }
  0x35   :  { %s59_s17 = sshll.u32 %s702_s16, 4  ;;  %p646_p10 = scmp.ne.s32.totalorder %s850_s5, %s645_s21  ;;  %s60_s17 = int_to_ptr.vmem [resolvable:$true] %s59_s17 }
  0x36   :  { %p649_p11 = scmp.lt.u32.totalorder %s645_s21, %s850_s5 }
  0x38   :  { %p651_p12 = pnand %p649_p11, %p646_p10 }
  0x3a   :  { %654 = shalt.err (!%p651_p12)
}
  0x3b   :  { %s655_s1 = scalar_lea.vmem %s60_s17, 2048  ;;  %p660_p0 = scmp.lt.s32.totalorder %s60_s17, %s60_s17 }
  0x3c   :  { %p656_p13 = scmp.ne.s32.totalorder %s60_s17, %s655_s1  ;;  %p661_p1 = scmp.lt.s32.totalorder %s655_s1, %s655_s1 }
  0x3e   :  { %p662_p2 = por %p661_p1, %p660_p0 }
  0x40   :  { %p663_p3 = pnand %p662_p2, %p656_p13 }
  0x42   :  { %666 = shalt.err (!%p663_p3)
}
  0x43   :  { %65 = dma.hbm_to_vmem [thread:$0]  %s850_s5, 2048, %s60_s17, [#allocation9], %s698_s11, %s698_s11, %s699_s12  }
  0x44   :  { %689 = dma.done.wait [#allocation3], 128  }
  0x45   :  { %690 = vsyncadd [#allocation3], 4294967168 }
  0x46   :  { %691 = dma.done.wait [#allocation6], 2304  }
  0x47   :  { %692 = vsyncadd [#allocation6], 4294964992 }
  0x48   :  { %693 = dma.done.wait [#allocation9], 2048  }
  0x49   :  { %694 = vsyncadd [#allocation9], 4294965248  ;;  %v703_v0 = vmov 0.0|0.0   ;;  %vm704_vm0 = vmmov 0   ;;  %v705_v1 = vmov 0.0   ;;  %v81_v2 = vld [vmem:[#allocation5] sm:$0xff] }
  0x4a   :  { %510 = vmatprep.subr.bf16.mxu0 %v703_v0  ;;  %437 = vmatprep.mubr.msk.f32.mxu0 %vm704_vm0, %v705_v1  ;;  %v82_v3 = vld [vmem:[#allocation5 + $0x8] sm:$0xff]  ;;  %v165_v5 = vld [vmem:[#allocation7] sm:$0xff]  ;;  %v166_v6 = vld [vmem:[#allocation7 + $0x8] sm:$0xff]  ;;  %vm90_vm1 = vcmask 130048  }
  0x4b   :  { %513 = vmatprep.subr.bf16.mxu1 %v703_v0  ;;  %472 = vmatprep.mubr.msk.f32.mxu1 %vm704_vm0, %v705_v1  ;;  %v511_v4 = vpack.c.bf16 %v82_v3, %v81_v2  ;;  %v167_v7 = vld [vmem:[#allocation7 + $0x10] sm:$0xff]  ;;  %v514_v8 = vpack.c.bf16 %v166_v6, %v165_v5  ;;  %v168_v9 = vld [vmem:[#allocation7 + $0x18] sm:$0xff]  ;;  %v80_v10 = vld [vmem:[#allocation2] sm:$0xff] }
  0x4c   :  { %v517_v11 = vpack.c.bf16 %v168_v9, %v167_v7  ;;  %v169_v12 = vld [vmem:[#allocation7 + $0x20] sm:$0xff]  ;;  %v170_v13 = vld [vmem:[#allocation7 + $0x28] sm:$0xff]  ;;  %v171_v15 = vld [vmem:[#allocation7 + $0x30] sm:$0xff] }
  0x4d   :  { %512 = vmatpush3.bf16.msra.mxu0 %v511_v4  ;;  %515 = vmatpush3.bf16.msra.mxu1 %v514_v8  ;;  %v520_v14 = vpack.c.bf16 %v170_v13, %v169_v12  ;;  %v172_v16 = vld [vmem:[#allocation7 + $0x38] sm:$0xff]  ;;  %v173_v18 = vld [vmem:[#allocation7 + $0x40] sm:$0xff]  ;;  %v174_v19 = vld [vmem:[#allocation7 + $0x48] sm:$0xff] }
  0x4e   :  { %537 = vmatprep.subr.bf16.mxu0 %v703_v0  ;;  %516 = vmatprep.subr.bf16.mxu1 %v703_v0  ;;  %v523_v17 = vpack.c.bf16 %v172_v16, %v171_v15  ;;  %v526_v20 = vpack.c.bf16 %v174_v19, %v173_v18  ;;  %v175_v21 = vld [vmem:[#allocation7 + $0x50] sm:$0xff]  ;;  %v176_v22 = vld [vmem:[#allocation7 + $0x58] sm:$0xff]  ;;  %v177_v24 = vld [vmem:[#allocation7 + $0x60] sm:$0xff] }
  0x4f   :  { %v529_v23 = vpack.c.bf16 %v176_v22, %v175_v21  ;;  %v178_v25 = vld [vmem:[#allocation7 + $0x68] sm:$0xff]  ;;  %v179_v27 = vld [vmem:[#allocation7 + $0x70] sm:$0xff]  ;;  %v180_v28 = vld [vmem:[#allocation7 + $0x78] sm:$0xff] }
  0x50   :  { %438 = vmatmul.mubr.msk.f32.vlgmr.msra.gmra.mrb[0].mxu0 %vm90_vm1, %v80_v10  ;;  %v532_v26 = vpack.c.bf16 %v178_v25, %v177_v24  ;;  %v535_v29 = vpack.c.bf16 %v180_v28, %v179_v27  ;;  %v259_v30 = vld [vmem:[#allocation8] sm:$0xff]  ;;  %v260_v31 = vld [vmem:[#allocation8 + $0x8] sm:$0xff]  ;;  %v261_v32 = vld [vmem:[#allocation8 + $0x10] sm:$0xff]  ;;  %v352_v10 = vlaneseq }
  0x51   :  { %507 = vmatprep.mubr.msk.f32.mxu0 %vm704_vm0, %v705_v1  ;;  %518 = vmatpush3.bf16.msra.mxu1 %v517_v11  ;;  %v538_v33 = vpack.c.bf16 %v260_v31, %v259_v30  ;;  %v262_v34 = vld [vmem:[#allocation8 + $0x18] sm:$0xff]  ;;  %v263_v36 = vld [vmem:[#allocation8 + $0x20] sm:$0xff]  ;;  %v264_v37 = vld [vmem:[#allocation8 + $0x28] sm:$0xff] }
  0x52   :  { %519 = vmatprep.subr.bf16.mxu1 %v703_v0  ;;  %v541_v35 = vpack.c.bf16 %v262_v34, %v261_v32  ;;  %v544_v38 = vpack.c.bf16 %v264_v37, %v263_v36  ;;  %v265_v39 = vld [vmem:[#allocation8 + $0x30] sm:$0xff]  ;;  %v266_v40 = vld [vmem:[#allocation8 + $0x38] sm:$0xff]  ;;  %v267_v42 = vld [vmem:[#allocation8 + $0x40] sm:$0xff]  ;;  %v353_v13 = vand.u32 127, %v352_v10 }
  0x53   :  { %539 = vmatpush3.bf16.msra.mxu0 %v538_v33  ;;  %v547_v41 = vpack.c.bf16 %v266_v40, %v265_v39  ;;  %v268_v43 = vld [vmem:[#allocation8 + $0x48] sm:$0xff]  ;;  %v269_v50 = vld [vmem:[#allocation8 + $0x50] sm:$0xff]  ;;  %v270_v51 = vld [vmem:[#allocation8 + $0x58] sm:$0xff] }
  0x54   :  { %540 = vmatprep.subr.bf16.mxu0 %v703_v0  ;;  %v550_v44 = vpack.c.bf16 %v268_v43, %v267_v42  ;;  %v392_v45 = vld [vmem:[%s847_s2] ss:$0 sm:$0xff]  ;;  %v553_v52 = vpack.c.bf16 %v270_v51, %v269_v50  ;;  %v271_v53 = vld [vmem:[#allocation8 + $0x60] sm:$0xff]  ;;  %v273_v56 = vld [vmem:[#allocation8 + $0x70] sm:$0xff]  ;;  %vm354_vm3 = vcmp.ge.s32.totalorder %v353_v13, 4  ;;  %vm355_vm4 = vcmp.lt.s32.totalorder %v353_v13, 8 }
  0x55   :  { %521 = vmatpush3.bf16.msra.mxu1 %v520_v14  ;;  %v272_v54 = vld [vmem:[#allocation8 + $0x68] sm:$0xff]  ;;  %v274_v57 = vld [vmem:[#allocation8 + $0x78] sm:$0xff]  ;;  %vm356_vm5 = vmand %vm354_vm3, %vm355_vm4 }
  0x56   :  { %522 = vmatprep.subr.bf16.mxu1 %v703_v0  ;;  %v556_v55 = vpack.c.bf16 %v272_v54, %v271_v53  ;;  %v559_v58 = vpack.c.bf16 %v274_v57, %v273_v56  ;;  %v394_v59 = vld [vmem:[%s849_s4] ss:$0 sm:$0xff]  ;;  %s706_s4 = smov [#allocation10]  }
  0x57   :  { %542 = vmatpush3.bf16.msra.mxu0 %v541_v35  ;;  %v395_v1 = vld [vmem:[%s851_s6] ss:$0 sm:$0xff]  ;;  %s381_s6 = sshll.u32 %s706_s4, 4  ;;  %s382_s6 = int_to_ptr.vmem [resolvable:$true] %s381_s6 }
  0x58   :  { %543 = vmatprep.subr.bf16.mxu0 %v703_v0  ;;  %s667_s28 = scalar_lea.vmem %s382_s6, 128  ;;  %p672_p5 = scmp.lt.s32.totalorder %s382_s6, %s382_s6 }
  0x59   :  { %524 = vmatpush3.bf16.msra.mxu1 %v523_v17  ;;  %p668_p4 = scmp.ne.s32.totalorder %s382_s6, %s667_s28  ;;  %p673_p6 = scmp.lt.s32.totalorder %s667_s28, %s667_s28 }
  0x5a   :  { %525 = vmatprep.subr.bf16.mxu1 %v703_v0 }
  0x5b   :  { %545 = vmatpush3.bf16.msra.mxu0 %v544_v38  ;;  %p674_p7 = por %p673_p6, %p672_p5 }
  0x5c   :  { %546 = vmatprep.subr.bf16.mxu0 %v703_v0 }
  0x5d   :  { %527 = vmatpush3.bf16.msra.mxu1 %v526_v20  ;;  %p675_p8 = pnand %p674_p7, %p668_p4 }
  0x5e   :  { %528 = vmatprep.subr.bf16.mxu1 %v703_v0 }
  0x5f   :  { %548 = vmatpush3.bf16.msra.mxu0 %v547_v41 }
  0x60   :  { %549 = vmatprep.subr.bf16.mxu0 %v703_v0 }
  0x61   :  { %530 = vmatpush3.bf16.msra.mxu1 %v529_v23 }
  0x62   :  { %531 = vmatprep.subr.bf16.mxu1 %v703_v0 }
  0x63   :  { %551 = vmatpush3.bf16.msra.mxu0 %v550_v44 }
  0x64   :  { %552 = vmatprep.subr.bf16.mxu0 %v703_v0 }
  0x65   :  { %533 = vmatpush3.bf16.msra.mxu1 %v532_v26 }
  0x66   :  { %534 = vmatprep.subr.bf16.mxu1 %v703_v0 }
  0x67   :  { %554 = vmatpush3.bf16.msra.mxu0 %v553_v52 }
  0x68   :  { %555 = vmatprep.subr.bf16.mxu0 %v703_v0 }
  0x69   :  { %536 = vmatpush3.bf16.msra.mxu1 %v535_v29 }
  0x6b   :  { %557 = vmatpush3.bf16.msra.mxu0 %v556_v55 }
  0x6c   :  { %558 = vmatprep.subr.bf16.mxu0 %v703_v0 }
  0x6f   :  { %560 = vmatpush3.bf16.msra.mxu0 %v559_v58 }
 0x123   :  { %v160_v46 = vpop.f32.mrb[0].mxu0 }
 0x124   :  { %v161_v47 = vadd.f32 %v392_v45, %v160_v46  ;;  %v439_v48 = vpop.f32.mrb[1].mxu0 }
 0x126   :  { %571 = vtanh.f32 %v161_v47 }
 0x130   :  { %v572_v49 = vpop.eup %571 }
 0x131   :  { %473 = vmatmul.mubr.f32.vlgmr.msra.gmra.mrb[0].mxu1 %v572_v49 }
 0x204   :  { %v254_v60 = vpop.f32.mrb[0].mxu1 }
 0x205   :  { %v255_v61 = vadd.f32 %v394_v59, %v254_v60  ;;  %v474_v62 = vpop.f32.mrb[1].mxu1 }
 0x207   :  { %573 = vtanh.f32 %v255_v61 }
 0x211   :  { %v574_v63 = vpop.eup %573 }
 0x212   :  { %508 = vmatmul.mubr.f32.vlgmr.msra.gmra.mrb[2].mxu0 %v574_v63 }
 0x2e5   :  { %v348_v2 = vpop.f32.mrb[2].mxu0 }
 0x2e6   :  { %v349_v3 = vadd.f32 %v395_v1, %v348_v2  ;;  %v509_v4 = vpop.f32.mrb[3].mxu0 }
 0x2e8   :  { %v358_v5 = vand.u32 2147483647, %v349_v3  ;;  %v357_v17 = vmax.f32 %v349_v3, 0.0 }
 0x2ea   :  { %v359_v0 = vsub.f32 0.0, %v358_v5 }
 0x2ec   :  { %v360_v6 = vmul.f32 1.442695, %v359_v0 }
 0x2ee   :  { %575 = vpow2.f32 %v360_v6 }
 0x2f8   :  { %v576_v7 = vpop.eup %575 }
 0x2f9   :  { %v362_v8 = vadd.f32 1.0, %v576_v7  ;;  %v365_v9 = vmul.f32 -0.5, %v576_v7  ;;  %v368_v12 = vand.u32 2147483647, %v576_v7 }
 0x2fb   :  { %577 = vlog2.f32 %v362_v8  ;;  %v366_v11 = vadd.f32 1.0, %v365_v9  ;;  %vm369_vm2 = vcmp.lt.f32.partialorder %v368_v12, 0.0004427343 }
 0x2fd   :  { %v367_v16 = vmul.f32 %v576_v7, %v366_v11 }
 0x305   :  { %v578_v14 = vpop.eup %577 }
 0x306   :  { %v364_v15 = vmul.f32 0.6931472, %v578_v14 }
 0x308   :  { %v370_v18 = vsel %vm369_vm2, %v367_v16, %v364_v15 }
 0x309   :  { %v371_v19 = vadd.f32 %v370_v18, %v357_v17 }
 0x30b   :  { %v372_v20 = vadd.f32 1e-05, %v371_v19 }
 0x30d   :  { %v373_v21 = vsel %vm356_vm5, %v372_v20, %v349_v3 }
 0x30e   :  { %374 = vst [vmem:[#allocation10] sm:$0xff] %v373_v21 }
 0x30f   :  { %678 = shalt.err (!%p675_p8)
}
 0x310   :  { %s679_s8 = scalar_lea.hbm %s852_s7, 128 }
 0x311   :  { %p680_p9 = scmp.ne.s32.totalorder %s852_s7, %s679_s8  ;;  %p683_p10 = scmp.lt.u32.totalorder %s679_s8, %s852_s7 }
 0x313   :  { %p685_p11 = pnand %p683_p10, %p680_p9 }
 0x315   :  { %688 = shalt.err (!%p685_p11)
}
 0x316   :  { %384 = dma.vmem_to_hbm [thread:$0]  %s382_s6, 128, %s852_s7, [#allocation4]  }
 0x317   :  { %695 = dma.done.wait [#allocation4], 128  }
 0x318   :  { %696 = vsyncadd [#allocation4], 4294967168 }
 0x319   :  { %388 = vsyncpa [#allocation3], 1 }
 0x31a   :  { %389 = vsyncpa [#allocation6], 1 }
 0x31b   :  { %390 = vsyncpa [#allocation9], 1 }
 0x31c   :  { %391 = vsyncpa [#allocation4], 1 }

</bundles_post_ra>
